<compile_context>
chip_gen: v7x
topology: tpu7x:2x2x1
jax: 0.10.0
libtpu: 0.0.40
codegen_flags: <defaults>
</compile_context>

<pallas_src>
import math

import jax
import jax.numpy as jnp
from jax.experimental import pallas as pl
from jax.experimental.pallas import tpu as pltpu


def _round_up(x: int, m: int) -> int:
    return (x + m - 1) // m * m


def _vmem_budget():
    """Return (tile_budget_bytes, vmem_limit_bytes), gated on chip generation."""
    try:
        cap = int(pltpu.get_tpu_info().vmem_capacity_bytes)
    except Exception:
        cap = 64 * 1024 * 1024            # conservative: assume v7x-class core
    if cap >= 96 * 1024 * 1024:           # v5e / v6e: 128 MiB VMEM
        return 56 * 1024 * 1024, 96 * 1024 * 1024
    # v7x-class: 64 MiB per TensorCore -> leave headroom for compiler scratch.
    return 36 * 1024 * 1024, 48 * 1024 * 1024


def _choose_tiles(m, n, k, x_bytes, w_bytes, o_bytes, budget_bytes):
    """Pick (tm, tn, tk).  tk == k means full-K blocks (no reduction axis)."""
    row_align = 16 if x_bytes < 4 else 8          # bf16 sublane packing
    tm_cap = min(512, m if m < row_align else _round_up(m, row_align))
    tn_cap = min(512, n if n < 128 else _round_up(n, 128))

    def footprint(tm_, tn_, tk_, with_acc):
        f = (2 * tm_ * tk_ * x_bytes        # x block, double buffered
             + 2 * tk_ * tn_ * w_bytes      # w block, double buffered
             + 2 * tn_ * 4                  # bias block
             + 2 * tm_ * tn_ * o_bytes)     # out block, double buffered
        if with_acc:
            f += tm_ * tn_ * 4              # f32 accumulator scratch
        return f

    # 1) Full-K blocks at the caps (lowest HBM traffic: resident operand read once).
    if footprint(tm_cap, tn_cap, k, False) <= budget_bytes:
        return tm_cap, tn_cap, k

    # 2) Still full-K: shrink tn, then tm, but never below 128 (keep MXU fed).
    tm_, tn_ = tm_cap, tn_cap
    while footprint(tm_, tn_, k, False) > budget_bytes and tn_ > 128:
        tn_ = max(128, tn_ // 2)
    while footprint(tm_, tn_, k, False) > budget_bytes and tm_ > 128:
        tm_ = max(128, _round_up(tm_ // 2, row_align))
    if footprint(tm_, tn_, k, False) <= budget_bytes:
        return tm_, tn_, k

    # 3) K-tiling (f32 accumulator): prefer the largest multiple-of-128 divisor
    #    of K that fits with full-cap MXU-shaped tiles.
    divisors = [t for t in (2048, 1024, 512, 256, 128) if t < k and k % t == 0]
    for tk in divisors:
        if footprint(tm_cap, tn_cap, tk, True) <= budget_bytes:
            return tm_cap, tn_cap, tk
    if divisors:
        tk = divisors[-1]                  # smallest available K tile
        tm_, tn_ = tm_cap, tn_cap
        while footprint(tm_, tn_, tk, True) > budget_bytes and tn_ > 128:
            tn_ = max(128, tn_ // 2)
        while footprint(tm_, tn_, tk, True) > budget_bytes and tm_ > 128:
            tm_ = max(128, _round_up(tm_ // 2, row_align))
        if footprint(tm_, tn_, tk, True) <= budget_bytes:
            return tm_, tn_, tk

    # 4) Last resort (huge K with no multiple-of-128 divisor): full K, let tm drop.
    tm_, tn_ = min(128, tm_cap), min(128, tn_cap)
    while footprint(tm_, tn_, k, False) > budget_bytes and tm_ > row_align:
        tm_ = max(row_align, _round_up(tm_ // 2, row_align))
    return tm_, tn_, k


def _make_kernel(k_tiled: bool, has_bias: bool):
    if not k_tiled:
        if has_bias:
            def kernel(x_ref, w_ref, b_ref, o_ref):
                acc = jnp.dot(x_ref[...], w_ref[...],
                              preferred_element_type=jnp.float32)
                o_ref[...] = (acc + b_ref[...]).astype(o_ref.dtype)
        else:
            def kernel(x_ref, w_ref, o_ref):
                acc = jnp.dot(x_ref[...], w_ref[...],
                              preferred_element_type=jnp.float32)
                o_ref[...] = acc.astype(o_ref.dtype)
    else:
        if has_bias:
            def kernel(x_ref, w_ref, b_ref, o_ref, acc_ref):
                @pl.when(pl.program_id(2) == 0)
                def _init():
                    acc_ref[...] = jnp.zeros_like(acc_ref)
                acc_ref[...] += jnp.dot(x_ref[...], w_ref[...],
                                        preferred_element_type=jnp.float32)
                @pl.when(pl.program_id(2) == pl.num_programs(2) - 1)
                def _fin():
                    o_ref[...] = (acc_ref[...] + b_ref[...]).astype(o_ref.dtype)
        else:
            def kernel(x_ref, w_ref, o_ref, acc_ref):
                @pl.when(pl.program_id(2) == 0)
                def _init():
                    acc_ref[...] = jnp.zeros_like(acc_ref)
                acc_ref[...] += jnp.dot(x_ref[...], w_ref[...],
                                        preferred_element_type=jnp.float32)
                @pl.when(pl.program_id(2) == pl.num_programs(2) - 1)
                def _fin():
                    o_ref[...] = acc_ref[...].astype(o_ref.dtype)
    return kernel


def prepare_mha(x, weight, bias, heads: int, d_k: int, *,
                compute_dtype=None, vmem_budget_bytes=None):
    """PrepareMHA forward: (..., d_model) -> (..., heads, d_k).

    weight: (heads*d_k, d_model)  torch nn.Linear layout.
    bias:   (heads*d_k,) or None.
    compute_dtype: e.g. jnp.bfloat16 for full-rate MXU in production
                   (accumulation stays f32; output keeps x.dtype).
    """
    head_shape = x.shape[:-1]
    d_model = x.shape[-1]
    n_out = heads * d_k
    m = int(math.prod(head_shape)) if head_shape else 1
    out_dtype = x.dtype
    has_bias = bias is not None

    x2d = x.reshape(m, d_model)
    # TODO(synk): in a real model, store the weight pre-transposed at init
    # instead of transposing per call.
    w2d = jnp.transpose(weight)                       # (d_model, n_out), MXU-native
    if compute_dtype is not None:
        x2d = x2d.astype(compute_dtype)
        w2d = w2d.astype(compute_dtype)

    budget, vmem_limit = _vmem_budget()
    if vmem_budget_bytes is not None:
        budget = vmem_budget_bytes

    tm, tn, tk = _choose_tiles(m, n_out, d_model,
                               x2d.dtype.itemsize, w2d.dtype.itemsize,
                               jnp.dtype(out_dtype).itemsize, budget)
    m_tiles = pl.cdiv(m, tm)
    n_tiles = pl.cdiv(n_out, tn)
    k_tiled = tk < d_model
    k_tiles = d_model // tk if k_tiled else 1

    x_hbm = m * d_model * x2d.dtype.itemsize
    w_hbm = n_out * d_model * w2d.dtype.itemsize
    o_hbm = m * n_out * jnp.dtype(out_dtype).itemsize

    if k_tiled:
        grid = (n_tiles, m_tiles, k_tiles)
        x_spec = pl.BlockSpec((tm, tk), lambda j, i, kk: (i, kk))
        w_spec = pl.BlockSpec((tk, tn), lambda j, i, kk: (kk, j))
        b_spec = pl.BlockSpec((1, tn), lambda j, i, kk: (0, j))
        o_spec = pl.BlockSpec((tm, tn), lambda j, i, kk: (i, j))
        sem = ("parallel", "parallel", "arbitrary")
        scratch = [pltpu.VMEM((tm, tn), jnp.float32)]
        x_reads, w_reads = n_tiles, m_tiles
    else:
        # Adaptive residency: make the operand with the larger re-read cost
        # resident (constant block index along the inner grid axis).
        x_resident = (w_hbm * m_tiles + x_hbm) < (x_hbm * n_tiles + w_hbm)
        if x_resident:
            grid = (m_tiles, n_tiles)                 # N innermost: X resident
            x_spec = pl.BlockSpec((tm, d_model), lambda i, j: (i, 0))
            w_spec = pl.BlockSpec((d_model, tn), lambda i, j: (0, j))
            b_spec = pl.BlockSpec((1, tn), lambda i, j: (0, j))
            o_spec = pl.BlockSpec((tm, tn), lambda i, j: (i, j))
            x_reads, w_reads = 1, m_tiles
        else:
            grid = (n_tiles, m_tiles)                 # M innermost: W resident
            x_spec = pl.BlockSpec((tm, d_model), lambda j, i: (i, 0))
            w_spec = pl.BlockSpec((d_model, tn), lambda j, i: (0, j))
            b_spec = pl.BlockSpec((1, tn), lambda j, i: (0, j))
            o_spec = pl.BlockSpec((tm, tn), lambda j, i: (i, j))
            x_reads, w_reads = n_tiles, 1
        sem = ("parallel", "parallel")
        scratch = []

    operands = [x2d, w2d]
    in_specs = [x_spec, w_spec]
    if has_bias:
        operands.append(bias.reshape(1, n_out).astype(jnp.float32))
        in_specs.append(b_spec)

    cost = pl.CostEstimate(
        flops=2 * m * d_model * n_out,
        transcendentals=0,
        bytes_accessed=(x_hbm * x_reads + w_hbm * w_reads
                        + (n_out * 4 if has_bias else 0) + o_hbm))

    out2d = pl.pallas_call(
        _make_kernel(k_tiled, has_bias),
        out_shape=jax.ShapeDtypeStruct((m, n_out), out_dtype),
        grid_spec=pltpu.PrefetchScalarGridSpec(
            num_scalar_prefetch=0,
            grid=grid,
            in_specs=in_specs,
            out_specs=o_spec,
            scratch_shapes=scratch),
        compiler_params=pltpu.CompilerParams(
            dimension_semantics=sem,
            vmem_limit_bytes=vmem_limit),
        cost_estimate=cost,
    )(*operands)

    return out2d.reshape(*head_shape, heads, d_k)


if __name__ == "__main__":
    key = jax.random.PRNGKey(0)

    def run_case(seq, batch, d_model, heads, d_k, case_key, *, use_bias=True,
                 vmem_budget_bytes=None, tol=1e-3):
        kx, kw, kb = jax.random.split(case_key, 3)
        x = jax.random.normal(kx, (seq, batch, d_model), dtype=jnp.float32)
        bound = 1.0 / math.sqrt(d_model)
        weight = jax.random.uniform(kw, (heads * d_k, d_model),
                                    minval=-bound, maxval=bound,
                                    dtype=jnp.float32)
        bias = (jax.random.uniform(kb, (heads * d_k,),
                                   minval=-bound, maxval=bound,
                                   dtype=jnp.float32) if use_bias else None)

        out = prepare_mha(x, weight, bias, heads, d_k,
                          vmem_budget_bytes=vmem_budget_bytes)
        jax.block_until_ready(out)
        assert out.shape == (seq, batch, heads, d_k)

        ref = jnp.dot(x.reshape(-1, d_model), weight.T,
                      precision=jax.lax.Precision.HIGHEST)
        if use_bias:
            ref = ref + bias
        ref = ref.reshape(seq, batch, heads, d_k)
        err = float(jnp.max(jnp.abs(out - ref)))
        assert err <= tol, f"max abs err {err}"

    k1, k2, k3 = jax.random.split(key, 3)
    # Small shape consistent with the module (sub-128 output lanes, 1x1 grid).
    run_case(seq=8, batch=2, d_model=32, heads=4, d_k=8, case_key=k1)
    # No-bias path, full-K MXU-shaped blocks (partial-free tiles).
    run_case(seq=128, batch=4, d_model=384, heads=6, d_k=64, case_key=k2,
             use_bias=False)
    # Force the K-tiled accumulator path + multi-tile N grid with a tiny
    # artificial VMEM budget (exercises pl.when init/finalize).
    run_case(seq=64, batch=4, d_model=512, heads=8, d_k=32, case_key=k3,
             vmem_budget_bytes=1 * 1024 * 1024)

    print("KERNEL_OK")
</pallas_src>

<mosaic_0001>
module attributes {stable_mosaic.version = 11 : i64} {
  func.func @kernel(%arg0: i32, %arg1: i32, %arg2: memref<16x32xf32, #tpu.memory_space<vmem>>, %arg3: memref<32x32xf32, #tpu.memory_space<vmem>>, %arg4: memref<1x32xf32, #tpu.memory_space<vmem>>, %arg5: memref<16x32xf32, #tpu.memory_space<vmem>>) attributes {dimension_semantics = [#tpu.dimension_semantics<parallel>, #tpu.dimension_semantics<parallel>], iteration_bounds = array<i64: 1, 1>, scalar_prefetch = 0 : i64, scratch_operands = 0 : i64, tpu.core_type = #tpu.core_type<tc>, window_params = [{transform_indices = @transform_0, window_bounds = array<i64: 16, 32>}, {transform_indices = @transform_1, window_bounds = array<i64: 32, 32>}, {transform_indices = @transform_2, window_bounds = array<i64: 1, 32>}, {transform_indices = @transform_3, window_bounds = array<i64: 16, 32>}]} {
    %c0 = arith.constant 0 : index
    %c0_0 = arith.constant 0 : index
    %0 = vector.load %arg2[%c0, %c0_0] : memref<16x32xf32, #tpu.memory_space<vmem>>, vector<16x32xf32>
    %c0_1 = arith.constant 0 : index
    %c0_2 = arith.constant 0 : index
    %1 = vector.load %arg3[%c0_1, %c0_2] : memref<32x32xf32, #tpu.memory_space<vmem>>, vector<32x32xf32>
    %cst = arith.constant dense<0.000000e+00> : vector<16x32xf32>
    %2 = tpu.matmul %0, %1, %cst {dimension_numbers = #tpu.dot_dimension_numbers<[1], [0], [0], [1], [0, 0, 1, 1], [], []>} : vector<16x32xf32>, vector<32x32xf32>, vector<16x32xf32> -> vector<16x32xf32>
    %c0_3 = arith.constant 0 : index
    %c0_4 = arith.constant 0 : index
    %3 = vector.load %arg4[%c0_3, %c0_4] : memref<1x32xf32, #tpu.memory_space<vmem>>, vector<1x32xf32>
    %4 = vector.broadcast %3 : vector<1x32xf32> to vector<16x32xf32>
    %5 = arith.addf %2, %4 : vector<16x32xf32>
    %c0_5 = arith.constant 0 : index
    %c0_6 = arith.constant 0 : index
    %6 = vector.load %arg5[%c0_5, %c0_6] : memref<16x32xf32, #tpu.memory_space<vmem>>, vector<16x32xf32>
    tpu.vector_store %arg5[%c0_5, %c0_6], %5 {strides = array<i32>} : memref<16x32xf32, #tpu.memory_space<vmem>>, vector<16x32xf32>,
    return
  }
  func.func @transform_0(%arg0: i32, %arg1: i32) -> (i32, i32) {
    %c0_i32 = arith.constant 0 : i32
    %c0_i32_0 = arith.constant 0 : i32
    return %arg1, %c0_i32 : i32, i32
  }
  func.func @transform_1(%arg0: i32, %arg1: i32) -> (i32, i32) {
    %c0_i32 = arith.constant 0 : i32
    %c0_i32_0 = arith.constant 0 : i32
    return %c0_i32, %arg0 : i32, i32
  }
  func.func @transform_2(%arg0: i32, %arg1: i32) -> (i32, i32) {
    %c0_i32 = arith.constant 0 : i32
    %c0_i32_0 = arith.constant 0 : i32
    return %c0_i32, %arg0 : i32, i32
  }
  func.func @transform_3(%arg0: i32, %arg1: i32) -> (i32, i32) {
    %c0_i32 = arith.constant 0 : i32
    return %arg1, %arg0 : i32, i32
  }
}

</mosaic_0001>

<bundles_post_ra>
// kernel: tpu_custom_call.1
= control target key start
LH: loop header
LB: loop body
LE: loop exit
PB: predicated region body
PF: predicated region fallthrough
CT: control target
= control target key end

     0   :  { %8 = vsyncpa [#allocation3], 0  ;;  %s340_s0 = inlined_call_operand.hbm [shape: f32[16,32], index: 0, kind: input, shape index: {}]   ;;  %s341_s1 = inlined_call_operand.hbm [shape: f32[32,32], index: 1, kind: input, shape index: {}]   ;;  %s342_s2 = inlined_call_operand.vmem [shape: f32[1,32], index: 2, kind: input, shape index: {}]   ;;  %s343_s3 = inlined_call_operand.hbm [shape: f32[16,32], index: 3, kind: output, shape index: {}]  }
   0x1   :  { %9 = vsyncpa [#allocation6], 0 }
   0x2   :  { %10 = vsyncpa [#allocation4], 0  ;;  %s263_s12 = smov [#allocation2]   ;;  %s191_s16 = scalar_lea.hbm %s340_s0, 256 }
   0x3   :  { %s16_s13 = sshll.u32 %s263_s12, 4  ;;  %p192_p0 = scmp.ne.s32.totalorder %s340_s0, %s191_s16  ;;  %s17_s13 = int_to_ptr.vmem [resolvable:$true] %s16_s13 }
   0x4   :  { %p195_p1 = scmp.lt.u32.totalorder %s191_s16, %s340_s0 }
   0x6   :  { %p197_p2 = pnand %p195_p1, %p192_p0 }
   0x8   :  { %200 = shalt.err (!%p197_p2)
}
   0x9   :  { %s201_s21 = scalar_lea.vmem %s17_s13, 256  ;;  %p206_p4 = scmp.lt.s32.totalorder %s17_s13, %s17_s13 }
   0xa   :  { %p202_p3 = scmp.ne.s32.totalorder %s17_s13, %s201_s21  ;;  %p207_p5 = scmp.lt.s32.totalorder %s201_s21, %s201_s21 }
   0xc   :  { %p208_p6 = por %p207_p5, %p206_p4 }
   0xe   :  { %p209_p7 = pnand %p208_p6, %p202_p3 }
  0x10   :  { %212 = shalt.err (!%p209_p7)
}
  0x11   :  { %s264_s22 = smov 128   ;;  %s265_s23 = smov 8  }
  0x12   :  { %22 = dma.hbm_to_vmem [thread:$0]  %s340_s0, 256, %s17_s13, [#allocation3], %s264_s22, %s264_s22, %s265_s23  }
  0x13   :  { %s266_s26 = smov [#allocation5]   ;;  %s213_s30 = scalar_lea.hbm %s341_s1, 512 }
  0x14   :  { %s28_s27 = sshll.u32 %s266_s26, 4  ;;  %p214_p8 = scmp.ne.s32.totalorder %s341_s1, %s213_s30  ;;  %s29_s27 = int_to_ptr.vmem [resolvable:$true] %s28_s27 }
  0x15   :  { %p217_p9 = scmp.lt.u32.totalorder %s213_s30, %s341_s1 }
  0x17   :  { %p219_p10 = pnand %p217_p9, %p214_p8 }
  0x19   :  { %222 = shalt.err (!%p219_p10)
}
  0x1a   :  { %s223_s8 = scalar_lea.vmem %s29_s27, 512  ;;  %p228_p12 = scmp.lt.s32.totalorder %s29_s27, %s29_s27 }
  0x1b   :  { %p224_p11 = scmp.ne.s32.totalorder %s29_s27, %s223_s8  ;;  %p229_p13 = scmp.lt.s32.totalorder %s223_s8, %s223_s8 }
  0x1d   :  { %p230_p0 = por %p229_p13, %p228_p12 }
  0x1f   :  { %p231_p1 = pnand %p230_p0, %p224_p11 }
  0x21   :  { %234 = shalt.err (!%p231_p1)
}
  0x22   :  { %34 = dma.hbm_to_vmem [thread:$0]  %s341_s1, 512, %s29_s27, [#allocation6], %s264_s22, %s264_s22, %s265_s23  }
  0x23   :  { %257 = dma.done.wait [#allocation3], 256  }
  0x24   :  { %258 = vsyncadd [#allocation3], 4294967040 }
  0x25   :  { %259 = dma.done.wait [#allocation6], 512  }
  0x26   :  { %260 = vsyncadd [#allocation6], 4294966784  ;;  %vm56_vm0 = vcmask 261120   ;;  %v45_v0 = vld [vmem:[#allocation5] sm:$0xff]  ;;  %v46_v1 = vld [vmem:[#allocation5 + $0x8] sm:$0xff]  ;;  %s267_s11 = smov [#allocation7]  }
  0x27   :  { %v47_v2 = vld [vmem:[#allocation5 + $0x10] sm:$0xff]  ;;  %v178_v3 = vpack.c.bf16 %v46_v1, %v45_v0  ;;  %v48_v4 = vld [vmem:[#allocation5 + $0x18] sm:$0xff]  ;;  %s145_s12 = sshll.u32 %s267_s11, 4  ;;  %s146_s12 = int_to_ptr.vmem [resolvable:$true] %s145_s12 }
  0x28   :  { %v43_v5 = vld [vmem:[#allocation2] sm:$0xff]  ;;  %v182_v6 = vpack.c.bf16 %v48_v4, %v47_v2  ;;  %v44_v7 = vld [vmem:[#allocation2 + $0x8] sm:$0xff]  ;;  %s235_s13 = scalar_lea.vmem %s146_s12, 256  ;;  %p240_p3 = scmp.lt.s32.totalorder %s146_s12, %s146_s12 }
  0x29   :  { %175 = vmatprep.mubr.msk.f32.mxu0 %vm56_vm0, %v43_v5  ;;  %179 = vmatprep.subr.bf16.mxu0 %v178_v3  ;;  %v158_v8 = vld [vmem:[%s342_s2] ss:$0 sm:$0xff]  ;;  %p236_p2 = scmp.ne.s32.totalorder %s146_s12, %s235_s13  ;;  %p241_p4 = scmp.lt.s32.totalorder %s235_s13, %s235_s13 }
  0x2a   :  { %181 = vmatpush3.bf16.msra.mxu0 %v178_v3 }
  0x2b   :  { %183 = vmatprep.subr.bf16.mxu0 %v182_v6  ;;  %p242_p5 = por %p241_p4, %p240_p3 }
  0x2d   :  { %p243_p6 = pnand %p242_p5, %p236_p2 }
  0x2e   :  { %185 = vmatpush3.bf16.msra.mxu0 %v182_v6 }
  0x31   :  { %176 = vmatmul.mubr.msk.f32.vlgmr.msra.gmra.mrb[0].mxu0 %vm56_vm0, %v44_v7 }
 0x104   :  { %v177_v9 = vpop.f32.mrb[0].mxu0 }
 0x105   :  { %v135_v10 = vadd.f32 %v177_v9, %v158_v8  ;;  %v129_v11 = vpop.f32.mrb[1].mxu0 }
 0x106   :  { %v130_v12 = vadd.f32 %v158_v8, %v129_v11 }
 0x107   :  { %139 = vst.msk [vmem:[#allocation7 + $0x8] sm:$0xff] %vm56_vm0, %v135_v10 }
 0x108   :  { %138 = vst.msk [vmem:[#allocation7] sm:$0xff] %vm56_vm0, %v130_v12 }
 0x109   :  { %246 = shalt.err (!%p243_p6)
}
 0x10a   :  { %s247_s15 = scalar_lea.hbm %s343_s3, 256 }
 0x10b   :  { %p248_p7 = scmp.ne.s32.totalorder %s343_s3, %s247_s15  ;;  %p251_p8 = scmp.lt.u32.totalorder %s247_s15, %s343_s3 }
 0x10d   :  { %p253_p9 = pnand %p251_p8, %p248_p7 }
 0x10f   :  { %256 = shalt.err (!%p253_p9)
}
 0x110   :  { %151 = dma.vmem_to_hbm [thread:$0]  %s146_s12, 256, %s343_s3, [#allocation4], %s264_s22, %s264_s22, %s265_s23  }
 0x111   :  { %261 = dma.done.wait [#allocation4], 256  }
 0x112   :  { %262 = vsyncadd [#allocation4], 4294967040 }
 0x113   :  { %155 = vsyncpa [#allocation3], 1 }
 0x114   :  { %156 = vsyncpa [#allocation6], 1 }
 0x115   :  { %157 = vsyncpa [#allocation4], 1 }

</bundles_post_ra>
